<compile_context>
chip_gen: v7x
topology: tpu7x:2x2x1
jax: 0.10.0
libtpu: 0.0.40
codegen_flags: <defaults>
</compile_context>

<pallas_src>
import functools
import math

import jax
import jax.numpy as jnp
from jax.experimental import pallas as pl
from jax.experimental.pallas import tpu as pltpu


# --------------------------------------------------------------------------- kernel

def _moco_neg_kernel(inv_z_ref, q_ref, mem_ref, out_ref, *, inv_T, use_softmax):
    """One K-tile of the queue logits.

    inv_z_ref : (1,) f32 in SMEM (scalar prefetch). 1/Z in steady state, 1.0 otherwise.
    q_ref     : (B, D) resident across the whole K grid (index_map -> (0, 0)).
    mem_ref   : (TK, D) streamed queue tile (auto double-buffered by Pallas).
    out_ref   : (B, TK) lane-dense tile: l_neg/T (softmax) or exp(l_neg/T)/Z (NCE).
    """
    # MXU matmul on the un-scaled q (cast to the queue dtype so a bf16 queue feeds
    # the MXU natively), f32 accumulation; scale the f32 logits by 1/T afterwards
    # (matches torch's bmm-then-divide order; the VPU mul is hidden behind the DMA).
    logits = jax.lax.dot_general(
        q_ref[...].astype(mem_ref.dtype), mem_ref[...],
        dimension_numbers=(((1,), (1,)), ((), ())),          # q @ mem^T
        preferred_element_type=jnp.float32) * inv_T           # (B, TK)
    # TODO(synk): if bigger tiles + megacore push this near roofline, check the Mosaic
    # dump for a per-tile vxpose of the NT operand and switch to a (D, K) queue layout.
    if use_softmax:
        out_ref[...] = logits
    else:
        # Features are l2-normalized upstream, so exp(logit/T) stays in f32 range.
        out_ref[...] = jnp.exp(logits) * inv_z_ref[0]          # inv_Z == 1.0 on lazy init


# --------------------------------------------------------------------------- helpers

def _pick_block_k(K, D, mem_itemsize, B, budget_bytes=24 << 20):
    """Largest K tile that divides K, fits the per-tile VMEM budget, and (when the
    queue is big enough) leaves >= 4 — or at least an even >= 2 — tiles so the
    'parallel' K axis splits across both v7x TensorCores with double-buffering
    still overlapping per core. v5e/v6e (1 TC) just get the big-tile benefit."""
    candidates = (32768, 16384, 8192, 4096, 2048, 1024, 512, 256, 128)
    for want_tiles in (4, 2, 1):
        for cand in candidates:
            if cand * want_tiles > K or K % cand != 0:
                continue
            tiles = K // cand
            if want_tiles > 1 and tiles % 2 != 0:
                continue                                  # keep the megacore split balanced
            tile_bytes = (2 * cand * D * mem_itemsize     # double-buffered queue tile
                          + 2 * B * cand * 4              # double-buffered f32 out tile
                          + B * cand * 4                  # f32 logits intermediate
                          + 2 * B * D * 4)                # resident q
            if tile_bytes <= budget_bytes:
                return cand
    return K  # tiny / oddly-sized queue: a single full-width tile


def _vmem_limit_bytes(need_bytes):
    """Generation-keyed scoped-VMEM limit: ~44 MiB cap on v7x (64 MiB physical),
    64 MiB cap on v5e/v6e (128 MiB physical)."""
    cap = 44 << 20
    try:
        info = pltpu.get_tpu_info()
        phys = getattr(info, "vmem_capacity_bytes", None)
        if phys is not None and phys >= (96 << 20):
            cap = 64 << 20
    except Exception:
        pass
    return int(min(max(2 * need_bytes, 16 << 20), cap))


# --------------------------------------------------------------------------- wrapper

def memory_moco_forward(q, k, n, memory, params, index, *, T=0.07,
                        output_size=None, use_softmax=False, block_k=None):
    """Functional equivalent of MemoryMoCo.forward.

    q, k, n : (B, D) float32 feature rows.
    memory  : (K, D) queue; float32 or bfloat16 (bf16 halves the HBM read that
              bounds this kernel; the matmul accumulates in f32 either way).
    params  : (1,) float32 buffer holding Z (-1. before the lazy init).
    Returns (out, new_memory, new_params, new_index).

    Note: like torch's `self.params[0].item()`, Z is read host-side so the lazy-init
    branch stays at Python level (no lax.cond copy over the output slab per step).
    """
    B, D = q.shape
    K, _ = memory.shape
    if output_size is None:
        output_size = K
    inv_T = 1.0 / float(T)

    mem_itemsize = jnp.dtype(memory.dtype).itemsize
    if block_k is None:
        block_k = _pick_block_k(K, D, mem_itemsize, B)
    assert K % block_k == 0, "block_k must divide the queue size"
    num_k_tiles = K // block_k

    # Host-side Z read (mirrors torch `.item()`); decides the lazy-init branch.
    if use_softmax:
        lazy_init = False
        inv_z = jnp.ones((1,), jnp.float32)
    else:
        z_host = float(jax.device_get(params[0]))
        lazy_init = z_host < 0.0
        if lazy_init:
            inv_z = jnp.ones((1,), jnp.float32)        # kernel emits un-normalized exp
        else:
            inv_z = jnp.reshape(1.0 / params[0], (1,)).astype(jnp.float32)

    # Explicit scoped-VMEM budget: double-buffered queue + out tiles, the f32 logits
    # intermediate, and the resident q tile.
    vmem_need = (2 * block_k * D * mem_itemsize + 2 * B * block_k * 4
                 + B * block_k * 4 + 2 * B * D * 4 + (1 << 16))
    vmem_limit = _vmem_limit_bytes(vmem_need)

    neg_kernel = functools.partial(_moco_neg_kernel, inv_T=inv_T,
                                   use_softmax=use_softmax)
    neg = pl.pallas_call(
        neg_kernel,
        out_shape=jax.ShapeDtypeStruct((B, K), jnp.float32),
        grid_spec=pltpu.PrefetchScalarGridSpec(
            num_scalar_prefetch=1,                                    # inv_z -> SMEM
            grid=(num_k_tiles,),
            in_specs=[
                pl.BlockSpec((B, D), lambda j, inv_z: (0, 0)),        # q: resident
                pl.BlockSpec((block_k, D), lambda j, inv_z: (j, 0)),  # queue: streamed
            ],
            out_specs=pl.BlockSpec((B, block_k), lambda j, inv_z: (0, j)),
        ),
        compiler_params=pltpu.CompilerParams(
            dimension_semantics=("parallel",),   # disjoint output tiles -> megacore OK
            vmem_limit_bytes=vmem_limit,
        ),
    )(inv_z, q, memory)

    # The two 1-wide columns are ~2*B*D FLOPs: plain jnp (fuses in XLA), no extra
    # pallas_call launch, no (3, B, D) stack copy, no 1-lane masked stores.
    l_pos = jnp.sum(q * k, axis=-1, keepdims=True) * inv_T
    l_neg2 = jnp.sum(q * n, axis=-1, keepdims=True) * inv_T
    if not use_softmax:
        l_pos = jnp.exp(l_pos) * inv_z[0]
        l_neg2 = jnp.exp(l_neg2) * inv_z[0]

    # Column order [l_pos | l_neg | l_neg_2] = torch.cat((l_pos, l_neg, l_neg_2), 1).
    # This concat is the one remaining extra slab pass; it is kept only to preserve
    # the exact torch column layout (a tail layout would make it free).
    out = jnp.concatenate([l_pos, neg, l_neg2], axis=1)

    if use_softmax:
        new_params = params
    elif lazy_init:
        # One-time Z estimate (first call only): full mean over (B, K+2), then divide.
        # Runs off the steady-state path; torch also prints Z here (omitted).
        z_new = jnp.mean(out) * jnp.float32(output_size)
        out = out / z_new
        new_params = jnp.reshape(z_new, (1,)).astype(params.dtype)
    else:
        new_params = params

    # Queue update: memory.index_copy_(0, (arange(B) + index) % K, k)
    out_ids = (jnp.arange(B) + index) % K
    new_memory = memory.at[out_ids].set(k.astype(memory.dtype))
    new_index = (index + B) % K

    # TODO(synk): torch's `.squeeze()` collapses the batch dim when B == 1; here the
    # output is always (B, K + 2).
    return out, new_memory, new_params, new_index


# ----------------------------------------------------------------------------- demo

if __name__ == "__main__":
    B, D, K = 8, 128, 1024        # batch, inputSize, queueSize (small demo sizes)
    OUTPUT_SIZE = K
    T = 0.07

    key = jax.random.PRNGKey(0)
    kq, kk, kn, km, kq2, kk2, kn2 = jax.random.split(key, 7)

    def _unit(x):
        return x / jnp.linalg.norm(x, axis=-1, keepdims=True)

    # MoCo-style l2-normalized feature vectors (keeps exp(logit/T) in f32 range).
    q_feat = _unit(jax.random.normal(kq, (B, D), jnp.float32))
    k_feat = _unit(jax.random.normal(kk, (B, D), jnp.float32))
    n_feat = _unit(jax.random.normal(kn, (B, D), jnp.float32))

    # memory buffer init: uniform in [-stdv, stdv]; stored bf16 (halves HBM traffic).
    stdv = 1.0 / math.sqrt(D / 3)
    memory = jax.random.uniform(km, (K, D), jnp.float32,
                                minval=-stdv, maxval=stdv).astype(jnp.bfloat16)
    params = jnp.array([-1.0], jnp.float32)   # register_buffer('params', tensor([-1]))
    index = 0

    def ref_logits_over_T(q, k, n, mem):
        # Mirrors the kernel numerics: q cast to the queue dtype, matmul accumulated
        # in f32, logits scaled by 1/T afterwards.
        mem_f32 = mem.astype(jnp.float32)
        q_cast = q.astype(mem.dtype).astype(jnp.float32)
        l_neg = jnp.einsum("bd,kd->bk", q_cast, mem_f32,
                           precision=jax.lax.Precision.HIGHEST) / T
        l_pos = jnp.sum(q * k, axis=-1, keepdims=True) / T
        l_neg2 = jnp.sum(q * n, axis=-1, keepdims=True) / T
        return jnp.concatenate([l_pos, l_neg, l_neg2], axis=1)

    # ---- call 1: NCE branch, lazy Z initialization (params[0] < 0) -----------------
    out1, mem1, params1, index1 = memory_moco_forward(
        q_feat, k_feat, n_feat, memory, params, index,
        T=T, output_size=OUTPUT_SIZE, use_softmax=False)
    jax.block_until_ready((out1, mem1, params1))

    lt1 = ref_logits_over_T(q_feat, k_feat, n_feat, memory)
    e1 = jnp.exp(lt1)
    Z_ref = e1.mean() * OUTPUT_SIZE
    ref1 = e1 / Z_ref
    assert out1.shape == (B, K + 2)
    assert jnp.allclose(out1, ref1, rtol=2e-3, atol=1e-6), "NCE init output mismatch"
    assert jnp.allclose(params1[0], Z_ref, rtol=2e-3), "Z mismatch vs reference"
    assert jnp.allclose(mem1[:B].astype(jnp.float32),
                        k_feat.astype(memory.dtype).astype(jnp.float32)), "queue update mismatch"
    assert index1 == B

    # ---- call 2: NCE branch, steady state (1/Z applied inside the kernel) ----------
    q2 = _unit(jax.random.normal(kq2, (B, D), jnp.float32))
    k2 = _unit(jax.random.normal(kk2, (B, D), jnp.float32))
    n2 = _unit(jax.random.normal(kn2, (B, D), jnp.float32))
    out2, mem2, params2, index2 = memory_moco_forward(
        q2, k2, n2, mem1, params1, index1,
        T=T, output_size=OUTPUT_SIZE, use_softmax=False)
    jax.block_until_ready(out2)

    ref2 = jnp.exp(ref_logits_over_T(q2, k2, n2, mem1)) / params1[0]
    assert jnp.allclose(out2, ref2, rtol=2e-3, atol=1e-6), "NCE steady-state mismatch"
    assert jnp.allclose(params2[0], params1[0]), "Z must not change in steady state"
    assert index2 == (B + B) % K

    # ---- softmax branch: raw logits / T ---------------------------------------------
    out3, _, params3, _ = memory_moco_forward(
        q_feat, k_feat, n_feat, memory, params, index,
        T=T, output_size=OUTPUT_SIZE, use_softmax=True)
    jax.block_until_ready(out3)
    assert jnp.allclose(out3, lt1, rtol=2e-3, atol=1e-4), "softmax-branch logits mismatch"
    assert jnp.allclose(params3, params), "params must be untouched on the softmax branch"

    print("KERNEL_OK")
</pallas_src>

<mosaic_0001>
module attributes {stable_mosaic.version = 11 : i64} {
  func.func @_moco_neg_kernel(%arg0: i32, %arg1: memref<1xf32, #tpu.memory_space<smem>>, %arg2: memref<8x128xf32, #tpu.memory_space<vmem>>, %arg3: memref<256x128xbf16, #tpu.memory_space<vmem>>, %arg4: memref<8x256xf32, #tpu.memory_space<vmem>>) attributes {dimension_semantics = [#tpu.dimension_semantics<parallel>], iteration_bounds = array<i64: 4>, scalar_prefetch = 1 : i64, scratch_operands = 0 : i64, tpu.core_type = #tpu.core_type<tc>, window_params = [{pipeline_mode = #tpu.pipeline_mode<synchronous>, transform_indices = @transform_0, window_bounds = array<i64: 8, 128>}, {transform_indices = @transform_1, window_bounds = array<i64: 256, 128>}, {transform_indices = @transform_2, window_bounds = array<i64: 8, 256>}]} {
    %c0 = arith.constant 0 : index
    %c0_0 = arith.constant 0 : index
    %0 = vector.load %arg2[%c0, %c0_0] : memref<8x128xf32, #tpu.memory_space<vmem>>, vector<8x128xf32>
    %1 = arith.truncf %0 : vector<8x128xf32> to vector<8x128xbf16>
    %c0_1 = arith.constant 0 : index
    %c0_2 = arith.constant 0 : index
    %2 = vector.load %arg3[%c0_1, %c0_2] : memref<256x128xbf16, #tpu.memory_space<vmem>>, vector<256x128xbf16>
    %cst = arith.constant dense<0.000000e+00> : vector<8x256xf32>
    %3 = tpu.matmul %1, %2, %cst {dimension_numbers = #tpu.dot_dimension_numbers<[1], [1], [0], [0], [0, 0, 1, 0], [], []>} : vector<8x128xbf16>, vector<256x128xbf16>, vector<8x256xf32> -> vector<8x256xf32>
    %cst_3 = arith.constant 14.2857141 : f32
    %4 = vector.broadcast %cst_3 : f32 to vector<8x256xf32>
    %5 = arith.mulf %3, %4 : vector<8x256xf32>
    %6 = math.exp %5 : vector<8x256xf32>
    %c0_4 = arith.constant 0 : index
    %7 = memref.load %arg1[%c0_4] : memref<1xf32, #tpu.memory_space<smem>>
    %8 = vector.broadcast %7 : f32 to vector<8x256xf32>
    %9 = arith.mulf %6, %8 : vector<8x256xf32>
    %c0_5 = arith.constant 0 : index
    %c0_6 = arith.constant 0 : index
    %10 = vector.load %arg4[%c0_5, %c0_6] : memref<8x256xf32, #tpu.memory_space<vmem>>, vector<8x256xf32>
    tpu.vector_store %arg4[%c0_5, %c0_6], %9 {strides = array<i32>} : memref<8x256xf32, #tpu.memory_space<vmem>>, vector<8x256xf32>,
    return
  }
  func.func @transform_0(%arg0: i32, %arg1: memref<1xf32, #tpu.memory_space<smem>>) -> (i32, i32) {
    %c0_i32 = arith.constant 0 : i32
    %c0_i32_0 = arith.constant 0 : i32
    %c0_i32_1 = arith.constant 0 : i32
    return %c0_i32, %c0_i32_0 : i32, i32
  }
  func.func @transform_1(%arg0: i32, %arg1: memref<1xf32, #tpu.memory_space<smem>>) -> (i32, i32) {
    %c0_i32 = arith.constant 0 : i32
    %c0_i32_0 = arith.constant 0 : i32
    return %arg0, %c0_i32 : i32, i32
  }
  func.func @transform_2(%arg0: i32, %arg1: memref<1xf32, #tpu.memory_space<smem>>) -> (i32, i32) {
    %c0_i32 = arith.constant 0 : i32
    %c0_i32_0 = arith.constant 0 : i32
    return %c0_i32, %arg0 : i32, i32
  }
}

</mosaic_0001>

<bundles_post_ra>
// kernel: tpu_custom_call.1
= control target key start
LH: loop header
LB: loop body
LE: loop exit
PB: predicated region body
PF: predicated region fallthrough
CT: control target
= control target key end

     0   :  { %s962_s0 = inlined_call_operand.<no memory space> [shape: f32[1], index: 0, kind: input, shape index: {}]   ;;  %s963_s1 = inlined_call_operand.hbm [shape: f32[8,128], index: 1, kind: input, shape index: {}]   ;;  %s964_s2 = inlined_call_operand.hbm [shape: bf16[1024,128], index: 2, kind: input, shape index: {}]   ;;  %s965_s3 = inlined_call_operand.hbm [shape: f32[8,1024], index: 3, kind: output, shape index: {}]  }
   0x1   :  { %8 = sst [smem:[#allocation3]] %s962_s0 }
   0x2   :  { %9 = vsyncpa [#allocation5], 0 }
   0x3   :  { %10 = vsyncpa [#allocation8], 0 }
   0x4   :  { %12 = vsyncpa [#allocation8 + $0x1], 0 }
   0x5   :  { %13 = vsyncpa [#allocation6], 0 }
   0x6   :  { %15 = vsyncpa [#allocation6 + $0x1], 0  ;;  %s749_s14 = smov 0   ;;  %s751_s15 = smov 0  }
   0x7   :  { %s753_s16 = smov 0   ;;  %s755_s17 = smov 0  }
   0x8 LB: > { %s770_s0 = sadd.s32 4294967295, %s719_s17   ;;  %s460_s18 = sadd.s32 4294967294, %s719_s17   ;;  %s719_s17 = sphi %s755_s17, %s988_s17   ;;  %s715_s16 = sphi %s753_s16, %s987_s16   ;;  %s711_s15 = sphi %s751_s15, %s986_s15   ;;  %s707_s14 = sphi %s749_s14, %s985_s14  }
   0x9   : > { %s774_s19 = sadd.s32 1, %s719_s17   ;;  %s49_s20 = sadd.s32 1, %s715_s16 }
   0xa   : > { %s46_s21 = ssub.s32 %s719_s17, %s774_s19  ;;  %p56_p0 = scmp.ne.s32.totalorder %s715_s16, %s711_s15 }
   0xb   : > { %p47_p1 = scmp.eq.s32.totalorder %s46_s21, 0  ;;  %p57_p2 = scmp.eq.s32.totalorder %s719_s17, 0 }
   0xc   : > { %p62_p3 = scmp.ne.s32.totalorder %s711_s15, %s707_s14  ;;  %p966_p4 = scmp.eq.s32.totalorder %s770_s0, 0 }
   0xd   : > { %s786_s22 = scalar_select %p47_p1, %s715_s16, %s49_s20  }
   0xe   : > { %p788_p5 = por %p57_p2, %p56_p0  ;;  %p794_p6 = por %p966_p4, %p62_p3 }
   0xf   : > { %p86_p7 = scmp.eq.s32.totalorder %s770_s0, 3  ;;  %p92_p8 = scmp.eq.s32.totalorder %s460_s18, 3 }
  0x10   : > { %s972_s24 = scalar_select %p794_p6, 1, 0 }
  0x11   : > { %p461_p9 = scmp.ge.s32.totalorder %s719_s17, 1  ;;  %p99_p10 = scmp.lt.s32.totalorder %s719_s17, 5 }
  0x12   : > { %p801_p11 = por %p86_p7, %p56_p0  ;;  %p805_p12 = por %p92_p8, %p62_p3 }
  0x13   : > { %p809_p13 = pnand %p461_p9, %p99_p10  ;;  %s721_s28 = smov [#allocation4]  }
  0x14   : > { %s973_s25 = scalar_select %p801_p11, 1, 0 }
  0x15   : > { %s974_s26 = scalar_select %p805_p12, 1, 0 }
  0x16   : > { %s975_s27 = scalar_select %p809_p13, 1, 0 }
  0x17   : > { %p520_p1 = pneg %p809_p13  ;;  %s112_s29 = sshll.u32 %s721_s28, 4  ;;  %s113_s29 = int_to_ptr.vmem [resolvable:$true] %s112_s29 }
  0x18   : > { %p533_p2 = scmp.lt.s32.totalorder %s719_s17, 4  ;;  %s123_s4 = sand.u32 1, %s715_s16  }
  0x19   : > { %p818_p0 = pnand %p520_p1, %p966_p4  ;;  %s464_s6 = sshll.u32 %s123_s4, 7 }
  0x1a   : > { %p825_p3 = pnand %p533_p2, %p788_p5  ;;  %s591_s9 = scalar_lea.hbm %s963_s1, 128 }
  0x1b   : > { %p592_p7 = scmp.ne.s32.totalorder %s963_s1, %s591_s9  ;;  %p593_p8 = pneg %p818_p0 }
  0x1c   : > { %s977_s5 = scalar_select %p825_p3, 1, 0 }
  0x1d   : > { %p594_p9 = pnand %p593_p8, %p592_p7  ;;  %p598_p5 = scmp.lt.u32.totalorder %s591_s9, %s963_s1 }
  0x1f   : > { %p595_p10 = pneg %p594_p9 }
  0x21   : > { %p600_p1 = pnand %p598_p5, %p595_p10 }
  0x23   : > { %603 = shalt.err (!%p600_p1)
}
  0x24   : > { %s604_s18 = scalar_lea.vmem %s113_s29, 128  ;;  %p612_p11 = scmp.lt.s32.totalorder %s113_s29, %s113_s29 }
  0x25   : > { %p605_p2 = scmp.ne.s32.totalorder %s113_s29, %s604_s18  ;;  %p613_p6 = scmp.lt.s32.totalorder %s604_s18, %s604_s18 }
  0x27   : > { %p607_p4 = pnand %p605_p2, %p593_p8  ;;  %p614_p13 = por %p613_p6, %p612_p11 }
  0x29   : > { %p608_p12 = pneg %p607_p4 }
  0x2b   : > { %p615_p3 = pnand %p614_p13, %p608_p12 }
  0x2d   : > { %618 = shalt.err (!%p615_p3)
}
  0x2e   : > { %523 = dma.hbm_to_vmem [thread:$0]  (!%p818_p0), %s963_s1, 128, %s113_s29, [#allocation5]  }
  0x2f   : > { %s492_s23 = sshll.u32 %s719_s17, 11  ;;  %s127_s28 = scalar_lea.vmem [#allocation7], %s464_s6 }
  0x30   : > { %s134_s7 = sshll.u32 %s127_s28, 4  ;;  %s849_s10 = scalar_lea.hbm %s964_s2, %s492_s23  ;;  %s851_s7 = int_to_ptr.vmem [resolvable:$true] %s134_s7 }
  0x31   : > { %s853_s30 = scalar_lea.sflag [#allocation8], %s123_s4  ;;  %s619_s11 = scalar_lea.hbm %s849_s10, 2048 }
  0x32   : > { %p620_p4 = scmp.ne.s32.totalorder %s849_s10, %s619_s11  ;;  %p978_p6 = scmp.ne.s32.totalorder %s977_s5, 0 }
  0x33   : > { %s624_s12 = scalar_lea.hbm %s964_s2, 8192  ;;  %p625_p0 = scmp.lt.u32.totalorder %s849_s10, %s964_s2 }
  0x34   : > { %p621_p11 = pneg %p978_p6  ;;  %p626_p3 = scmp.lt.u32.totalorder %s624_s12, %s619_s11 }
  0x35   : > { %p628_p8 = scmp.lt.u32.totalorder %s619_s11, %s849_s10 }
  0x36   : > { %p622_p12 = pnand %p621_p11, %p620_p4  ;;  %p627_p7 = por %p626_p3, %p625_p0 }
  0x38   : > { %p623_p13 = pneg %p622_p12  ;;  %p629_p9 = por %p628_p8, %p627_p7 }
  0x3a   : > { %p630_p10 = pnand %p629_p9, %p623_p13 }
  0x3c   : > { %633 = shalt.err (!%p630_p10)
}
  0x3d   : > { %s634_s4 = scalar_lea.vmem %s851_s7, 2048  ;;  %s722_s20 = smov [#allocation7]  }
  0x3e   : > { %p635_p5 = scmp.ne.s32.totalorder %s851_s7, %s634_s4  ;;  %s639_s21 = sshll.u32 %s722_s20, 4  ;;  %s640_s21 = int_to_ptr.vmem [resolvable:$false] %s639_s21 }
  0x3f   : > { %s641_s23 = scalar_lea.vmem %s640_s21, 4096  ;;  %p642_p4 = scmp.lt.s32.totalorder %s851_s7, %s640_s21 }
  0x40   : > { %p637_p1 = pnand %p635_p5, %p621_p11  ;;  %p643_p12 = scmp.lt.s32.totalorder %s641_s23, %s634_s4 }
  0x42   : > { %p638_p2 = pneg %p637_p1  ;;  %p644_p0 = por %p643_p12, %p642_p4 }
  0x44   : > { %p645_p3 = pnand %p644_p0, %p638_p2 }
  0x46   : > { %648 = shalt.err (!%p645_p3)
}
  0x47   : > { %s723_s28 = smov 64   ;;  %s724_s8 = smov 4  }
  0x48   : > { %527 = dma.hbm_to_vmem [thread:$0]  (!%p978_p6), %s849_s10, 2048, %s851_s7, %s853_s30, %s723_s28, %s723_s28, %s724_s8  }
  0x49   : > { %p979_p11 = scmp.ne.s32.totalorder %s975_s27, 0 }
  0x4a   : > { %p980_p13 = scmp.eq.s32.totalorder (!%p979_p11), %s770_s0, 0 }
  0x4b   : > { %146 = sbr.rel (%p979_p11) target bundleno = 396 (0x18c), region = 28 }
  0x52   : > { %694 = dma.done.wait (%p980_p13), [#allocation5], 128   ;;  %p981_p7 = pmov %p980_p13 }
  0x53   : > { %s888_s9 = sand.u32 1, %s711_s15   ;;  %p982_p6 = scmp.ne.s32.totalorder %s972_s24, 0 }
  0x54   : > { %696 = vsyncadd (%p981_p7), [#allocation5], 4294967168  ;;  %s469_s11 = sshll.u32 %s888_s9, 7  ;;  %s153_s29 = scalar_lea.sflag [#allocation8], %s888_s9 }
  0x55   : > { %s892_s6 = scalar_lea.vmem [#allocation7], %s469_s11 }
  0x56   : > { %698 = dma.done.wait (%p982_p6), %s153_s29, 2048  }
  0x57   : > { %700 = vsyncadd (%p982_p6), %s153_s29, 4294965248  ;;  %v571_v0 = vld [vmem:[%s892_s6 + $0x40] sm:$0xff]   ;;  %v573_v2 = vld [vmem:[%s892_s6 + $0x48] sm:$0xff]   ;;  %s357_s24 = sld [smem:[#allocation3]]  ;;  %s470_s27 = sshll.u32 %s888_s9, 4 }
  0x58   : > { %v572_v1 = vld [vmem:[%s892_s6] sm:$0xff]   ;;  %494 = vmatprep.subr.bf16.mxu0 %v571_v0  ;;  %v574_v3 = vld [vmem:[%s892_s6 + $0x8] sm:$0xff]   ;;  %v575_v4 = vld [vmem:[%s892_s6 + $0x50] sm:$0xff]   ;;  %s493_s5 = sshll.u32 %s770_s0, 8  ;;  %s176_s7 = scalar_lea.vmem [#allocation9], %s470_s27 }
  0x59   : > { %495 = vmatpush3.bf16.xpose.msra.mxu0 %v572_v1  ;;  %v576_v5 = vld [vmem:[%s892_s6 + $0x10] sm:$0xff]   ;;  %v577_v6 = vld [vmem:[%s892_s6 + $0x58] sm:$0xff]   ;;  %v579_v10 = vld [vmem:[%s892_s6 + $0x60] sm:$0xff]   ;;  %s378_s10 = sshll.u32 %s176_s7, 4  ;;  %s919_s13 = scalar_lea.hbm %s965_s3, %s493_s5  ;;  %s921_s10 = int_to_ptr.vmem [resolvable:$true] %s378_s10 }
  0x5a   : > { %496 = vmatprep.subr.bf16.mxu0 %v573_v2  ;;  %v180_v7 = vld [vmem:[#allocation4] sm:$0xff]  ;;  %v580_v11 = vld [vmem:[%s892_s6 + $0x20] sm:$0xff]   ;;  %v581_v12 = vld [vmem:[%s892_s6 + $0x68] sm:$0xff]   ;;  %s364_s18 = scalar_lea.sflag [#allocation6], %s888_s9  ;;  %s649_s0 = scalar_lea.vmem %s921_s10, 256 }
  0x5b   : > { %v181_v8 = vpack.c.bf16 %v180_v7, %v180_v7  ;;  %v578_v9 = vld [vmem:[%s892_s6 + $0x18] sm:$0xff]   ;;  %v582_v13 = vld [vmem:[%s892_s6 + $0x28] sm:$0xff]   ;;  %v583_v14 = vld [vmem:[%s892_s6 + $0x70] sm:$0xff]   ;;  %p650_p8 = scmp.ne.s32.totalorder %s921_s10, %s649_s0  ;;  %p983_p9 = scmp.ne.s32.totalorder %s973_s25, 0 }
  0x5c   : > { %v584_v15 = vld [vmem:[%s892_s6 + $0x30] sm:$0xff]   ;;  %v585_v16 = vld [vmem:[%s892_s6 + $0x78] sm:$0xff]   ;;  %s725_s4 = smov [#allocation9]  }
  0x5d   : > { %510 = vmatprep.mubr.bf16.mxu0 %v181_v8  ;;  %v586_v17 = vld [vmem:[%s892_s6 + $0x38] sm:$0xff]   ;;  %v358_v26 = vstv %s357_s24  ;;  %p651_p10 = pnand %p650_p8, %p983_p9  ;;  %s653_s20 = sshll.u32 %s725_s4, 4  ;;  %s654_s20 = int_to_ptr.vmem [resolvable:$false] %s653_s20 }
  0x5e   : > { %s655_s21 = scalar_lea.vmem %s654_s20, 512  ;;  %p656_p1 = scmp.lt.s32.totalorder %s921_s10, %s654_s20 }
  0x5f   : > { %p652_p5 = pneg %p651_p10  ;;  %p657_p2 = scmp.lt.s32.totalorder %s655_s21, %s649_s0 }
  0x61   : > { %497 = vmatpush3.bf16.xpose.msra.mxu0 %v574_v3  ;;  %p658_p4 = por %p657_p2, %p656_p1 }
  0x62   : > { %498 = vmatprep.subr.bf16.mxu0 %v575_v4 }
  0x63   : > { %p659_p12 = pnand %p658_p4, %p652_p5 }
  0x69   : > { %499 = vmatpush3.bf16.xpose.msra.mxu0 %v576_v5 }
  0x6a   : > { %500 = vmatprep.subr.bf16.mxu0 %v577_v6 }
  0x71   : > { %501 = vmatpush3.bf16.xpose.msra.mxu0 %v578_v9 }
  0x72   : > { %502 = vmatprep.subr.bf16.mxu0 %v579_v10 }
  0x79   : > { %503 = vmatpush3.bf16.xpose.msra.mxu0 %v580_v11 }
  0x7a   : > { %504 = vmatprep.subr.bf16.mxu0 %v581_v12 }
  0x81   : > { %505 = vmatpush3.bf16.xpose.msra.mxu0 %v582_v13 }
  0x82   : > { %506 = vmatprep.subr.bf16.mxu0 %v583_v14 }
  0x89   : > { %507 = vmatpush3.bf16.xpose.msra.mxu0 %v584_v15 }
  0x8a   : > { %508 = vmatprep.subr.bf16.mxu0 %v585_v16 }
  0x91   : > { %509 = vmatpush3.bf16.xpose.msra.mxu0 %v586_v17 }
  0x98   : > { %511 = vmatmul.mubr.bf16.vlgmr.msra.gmra.mrb[0].mxu0 %v181_v8 }
 0x16b   : > { %v344_v18 = vpop.f32.mrb[0].mxu0 }
 0x16c   : > { %v351_v19 = vmul.f32 14.285714, %v344_v18  ;;  %v346_v20 = vpop.f32.mrb[1].mxu0 }
 0x16d   : > { %v352_v21 = vmul.f32 14.285714, %v346_v20  ;;  %v348_v22 = vpop.f32.mrb[2].mxu0 }
 0x16e   : > { %v353_v23 = vmul.f32 1.442695, %v351_v19  ;;  %v349_v24 = vpop.f32.mrb[3].mxu0 }
 0x16f   : > { %v355_v25 = vmul.f32 1.442695, %v352_v21 }
 0x170   : > { %587 = vpow2.f32 %v353_v23 }
 0x171   : > { %589 = vpow2.f32 %v355_v25 }
 0x17a   : > { %v588_v27 = vpop.eup %587 }
 0x17b   : > { %v590_v28 = vpop.eup %589  ;;  %v359_v29 = vmul.f32 %v588_v27, %v358_v26 }
 0x17c   : > { %v360_v30 = vmul.f32 %v590_v28, %v358_v26 }
 0x17d   : > { %361 = vst [vmem:[%s176_s7] sm:$0xff] %v359_v29 }
 0x17e   : > { %362 = vst [vmem:[%s176_s7 + $0x8] sm:$0xff] %v360_v30 }
 0x17f   : > { %662 = shalt.err (!%p659_p12)
}
 0x180   : > { %s663_s23 = scalar_lea.hbm %s919_s13, 256  ;;  %s667_s9 = scalar_lea.hbm %s965_s3, 1024 }
 0x181   : > { %p664_p0 = scmp.ne.s32.totalorder %s919_s13, %s663_s23  ;;  %p668_p13 = scmp.lt.u32.totalorder %s919_s13, %s965_s3 }
 0x182   : > { %p669_p7 = scmp.lt.u32.totalorder %s667_s9, %s663_s23  ;;  %p671_p8 = scmp.lt.u32.totalorder %s663_s23, %s919_s13 }
 0x183   : > { %p665_p3 = pnand %p664_p0, %p983_p9 }
 0x184   : > { %p670_p6 = por %p669_p7, %p668_p13 }
 0x185   : > { %p666_p11 = pneg %p665_p3 }
 0x186   : > { %p672_p10 = por %p671_p8, %p670_p6 }
 0x188   : > { %p673_p5 = pnand %p672_p10, %p666_p11 }
 0x18a   : > { %676 = shalt.err (!%p673_p5)
}
 0x18b   : > { %518 = dma.vmem_to_hbm [thread:$0]  (%p983_p9), %s921_s10, 256, %s919_s13, %s364_s18  }
 0x18c PF: > { %p535_p1 = scmp.ge.s32.totalorder %s719_s17, 2  ;;  %s390_s6 = sand.u32 1, %s707_s14  }
 0x18d   : > { %p984_p2 = scmp.ne.s32.totalorder %s974_s26, 0  ;;  %s391_s24 = scalar_lea.sflag [#allocation6], %s390_s6 }
 0x18f   : > { %p529_p4 = pnand %p535_p1, %p984_p2 }
 0x191   : > { %702 = dma.done.wait (!%p529_p4), %s391_s24, 256  }
 0x192   : > { %704 = vsyncadd (!%p529_p4), %s391_s24, 4294967040  ;;  %p18_p12 = scmp.ge.s32.totalorder %s774_s19, 6   ;;  %s985_s14 = smov %s711_s15 }
 0x193   : > { %s986_s15 = smov %s715_s16  ;;  %s987_s16 = smov %s786_s22 }
 0x194   : > { %s988_s17 = smov %s774_s19  ;;  %20 = sbr.rel (!%p18_p12) target bundleno = 8 (0x8), region = 78 }
 0x19b   :  { %396 = vsyncpa [#allocation5], 1 }
 0x19c   :  { %398 = vsyncpa [#allocation5 + $0x1], 1 }
 0x19d   :  { %399 = vsyncpa [#allocation8], 1 }
 0x19e   :  { %401 = vsyncpa [#allocation8 + $0x1], 1 }
 0x19f   :  { %402 = vsyncpa [#allocation6], 1 }
 0x1a0   :  { %404 = vsyncpa [#allocation6 + $0x1], 1 }

</bundles_post_ra>
